<compile_context>
chip_gen: v7x
topology: tpu7x:2x2x1
jax: 0.10.0
libtpu: 0.0.40
codegen_flags: <defaults>
</compile_context>

<pallas_src>
import functools

import jax
import jax.numpy as jnp
from jax.experimental import pallas as pl
from jax.experimental.pallas import tpu as pltpu


def _focal_loss_kernel(pred_ref, label_ref, out_ref, acc_ref, *, gamma, alpha):
    # grid = (P, blocks_per_p): axis 0 is the megacore/"parallel" split,
    # axis 1 is the sequential ("arbitrary") reduction over row tiles.
    j = pl.program_id(1)

    @pl.when(j == 0)
    def _():
        acc_ref[...] = jnp.zeros_like(acc_ref)

    x = pred_ref[...].astype(jnp.float32)
    y = label_ref[...].astype(jnp.float32)

    # Fused transcendental chain: a single exp(-|x|) feeds both the
    # numerically-stable BCE-with-logits and the sigmoid.
    e = jnp.exp(-jnp.abs(x))                               # EUP exp
    bce = jnp.maximum(x, 0.0) - x * y + jnp.log1p(e)       # EUP log1p
    sig_abs = 1.0 / (1.0 + e)                              # sigmoid(|x|)
    p = jnp.where(x >= 0.0, sig_abs, 1.0 - sig_abs)        # sigmoid(x)

    p_t = y * p + (1.0 - y) * (1.0 - p)
    t = 1.0 - p_t
    if gamma == 1.5:
        mod = t * jnp.sqrt(t)          # t**1.5 without the exp/log pair of pow
    elif gamma == 2.0:
        mod = t * t
    elif gamma == 1.0:
        mod = t
    elif gamma == 0.0:
        mod = jnp.ones_like(t)
    else:
        mod = jnp.power(t, gamma)

    loss = bce * mod
    if alpha > 0:
        loss = loss * (y * alpha + (1.0 - y) * (1.0 - alpha))

    # Wide lane-resident accumulator: only a sublane reduce per grid step.
    acc_ref[...] += jnp.sum(loss, axis=0, keepdims=True)   # (1, C)

    @pl.when(j == pl.num_programs(1) - 1)
    def _():
        # Cross-lane reduce + lane-dense (128-wide) store of this chunk's
        # partial sum; the divide-by-C happens once in the JAX wrapper.
        s = jnp.sum(acc_ref[...], axis=1, keepdims=True)   # (1, 1)
        out_ref[...] = jnp.broadcast_to(s.reshape(1, 1, 1), out_ref.shape)


def _choose_tiling(N, C, itemsize, *, vmem_tile_budget=24 << 20, max_tm=2048):
    """Pick (P, tm): P parallel row-chunks (megacore) and row tile tm.

    Budget: 2 inputs x 2 pipeline buffers x tm x C x itemsize must stay
    within `vmem_tile_budget` (safe for v7x's 64 MiB physical VMEM too).
    """
    cap = vmem_tile_budget // (4 * C * itemsize)
    cap = max(8, min(max_tm, (cap // 8) * 8))
    # Two row-chunks so v7x's second TensorCore is used; keep each chunk a
    # multiple of 8 rows.  Harmless (sequential) on single-TC v5e/v6e.
    P = 2 if (N // 8) % 2 == 0 else 1
    rows = N // P
    tm = 8
    for cand in range(8, min(cap, rows) + 1, 8):
        if rows % cand == 0:
            tm = cand
    return P, tm


def focal_loss(pred, label, gamma=1.5, alpha=0.25, *, tm=None, num_parallel=None):
    assert pred.shape == label.shape and pred.ndim == 2
    N, C = pred.shape
    assert N % 8 == 0 and C % 128 == 0, "pick TPU-friendly shapes (N%8==0, C%128==0)"

    itemsize = jnp.dtype(pred.dtype).itemsize
    auto_p, auto_tm = _choose_tiling(N, C, itemsize)
    P = int(num_parallel) if num_parallel is not None else auto_p
    tm_ = int(tm) if tm is not None else auto_tm
    assert N % P == 0 and (N // P) % tm_ == 0, "row split must tile evenly"

    rows_per_p = N // P
    blocks_per_p = rows_per_p // tm_

    kernel = functools.partial(
        _focal_loss_kernel, gamma=float(gamma), alpha=float(alpha)
    )

    # Advisory cost hint so XLA schedules neighbors around this call sensibly.
    cost = pl.CostEstimate(
        flops=20 * N * C,
        transcendentals=3 * N * C,
        bytes_accessed=int(pred.nbytes) + int(label.nbytes) + P * 128 * 4,
    )

    out = pl.pallas_call(
        kernel,
        out_shape=jax.ShapeDtypeStruct((P, 1, 128), jnp.float32),
        grid_spec=pltpu.PrefetchScalarGridSpec(
            num_scalar_prefetch=0,
            grid=(P, blocks_per_p),
            in_specs=[
                pl.BlockSpec((tm_, C), lambda p, j: (p * blocks_per_p + j, 0)),
                pl.BlockSpec((tm_, C), lambda p, j: (p * blocks_per_p + j, 0)),
            ],
            out_specs=pl.BlockSpec((1, 1, 128), lambda p, j: (p, 0, 0)),
            scratch_shapes=[pltpu.VMEM((1, C), jnp.float32)],
        ),
        compiler_params=pltpu.CompilerParams(
            # row-chunk axis parallel (megacore / v7x 2 TCs), reduction axis
            # arbitrary (output/accumulator resident across it)
            dimension_semantics=("parallel", "arbitrary"),
            vmem_limit_bytes=32 * 1024 * 1024,
        ),
        cost_estimate=cost,
    )(pred, label)

    # loss.mean(1).sum() for a 2-D tensor == total_sum / C
    return jnp.sum(out[:, 0, 0]) / jnp.float32(C)


def _focal_loss_ref(pred, label, gamma=1.5, alpha=0.25):
    pred = pred.astype(jnp.float32)
    label = label.astype(jnp.float32)
    bce = jnp.maximum(pred, 0.0) - pred * label + jnp.log1p(jnp.exp(-jnp.abs(pred)))
    p = jax.nn.sigmoid(pred)
    p_t = label * p + (1.0 - label) * (1.0 - p)
    loss = bce * (1.0 - p_t) ** gamma
    if alpha > 0:
        loss = loss * (label * alpha + (1.0 - label) * (1.0 - alpha))
    return loss.mean(1).sum()


if __name__ == "__main__":
    key = jax.random.PRNGKey(0)
    k1, k2 = jax.random.split(key)
    N, C = 16, 128  # e.g. 16 anchors x 128 classes (logits)
    pred = jax.random.normal(k1, (N, C), dtype=jnp.float32)
    label = (jax.random.uniform(k2, (N, C)) > 0.9).astype(jnp.float32)

    out = focal_loss(pred, label)
    out = jax.block_until_ready(out)

    ref = _focal_loss_ref(pred, label)
    assert jnp.allclose(out, ref, rtol=1e-5, atol=1e-5), (out, ref)
    print("KERNEL_OK")
</pallas_src>

<mosaic_0001>
module attributes {stable_mosaic.version = 11 : i64} {
  func.func @_focal_loss_kernel(%arg0: i32, %arg1: i32, %arg2: memref<8x128xf32, #tpu.memory_space<vmem>>, %arg3: memref<8x128xf32, #tpu.memory_space<vmem>>, %arg4: memref<1x1x128xf32, #tpu.memory_space<vmem>>, %arg5: memref<1x128xf32, #tpu.memory_space<vmem>>) attributes {dimension_semantics = [#tpu.dimension_semantics<parallel>, #tpu.dimension_semantics<arbitrary>], iteration_bounds = array<i64: 2, 1>, scalar_prefetch = 0 : i64, scratch_operands = 1 : i64, tpu.core_type = #tpu.core_type<tc>, window_params = [{transform_indices = @transform_0, window_bounds = array<i64: 8, 128>}, {transform_indices = @transform_1, window_bounds = array<i64: 8, 128>}, {transform_indices = @transform_2, window_bounds = array<i64: 1, 1, 128>}]} {
    %c0_i32 = arith.constant 0 : i32
    %0 = arith.cmpi eq, %arg1, %c0_i32 : i32
    %1 = arith.extui %0 : i1 to i32
    %c0_i32_0 = arith.constant 0 : i32
    %2 = arith.cmpi ne, %1, %c0_i32_0 : i32
    scf.if %2 {
      %cst_22 = arith.constant 0.000000e+00 : f32
      %52 = vector.broadcast %cst_22 : f32 to vector<1x128xf32>
      %c0_23 = arith.constant 0 : index
      %c0_24 = arith.constant 0 : index
      %53 = vector.load %arg5[%c0_23, %c0_24] : memref<1x128xf32, #tpu.memory_space<vmem>>, vector<1x128xf32>
      tpu.vector_store %arg5[%c0_23, %c0_24], %52 {strides = array<i32>} : memref<1x128xf32, #tpu.memory_space<vmem>>, vector<1x128xf32>,
    } else {
    }
    %c0 = arith.constant 0 : index
    %c0_1 = arith.constant 0 : index
    %3 = vector.load %arg2[%c0, %c0_1] : memref<8x128xf32, #tpu.memory_space<vmem>>, vector<8x128xf32>
    %c0_2 = arith.constant 0 : index
    %c0_3 = arith.constant 0 : index
    %4 = vector.load %arg3[%c0_2, %c0_3] : memref<8x128xf32, #tpu.memory_space<vmem>>, vector<8x128xf32>
    %5 = math.absf %3 : vector<8x128xf32>
    %cst = arith.constant 0.000000e+00 : f32
    %6 = vector.broadcast %cst : f32 to vector<8x128xf32>
    %7 = arith.subf %6, %5 : vector<8x128xf32>
    %8 = math.exp %7 : vector<8x128xf32>
    %cst_4 = arith.constant 0.000000e+00 : f32
    %9 = vector.broadcast %cst_4 : f32 to vector<8x128xf32>
    %10 = arith.maximumf %3, %9 : vector<8x128xf32>
    %11 = arith.mulf %3, %4 : vector<8x128xf32>
    %12 = arith.subf %10, %11 : vector<8x128xf32>
    %13 = math.log1p %8 : vector<8x128xf32>
    %14 = arith.addf %12, %13 : vector<8x128xf32>
    %cst_5 = arith.constant 1.000000e+00 : f32
    %15 = vector.broadcast %cst_5 : f32 to vector<8x128xf32>
    %16 = arith.addf %15, %8 : vector<8x128xf32>
    %cst_6 = arith.constant 1.000000e+00 : f32
    %17 = vector.broadcast %cst_6 : f32 to vector<8x128xf32>
    %18 = arith.divf %17, %16 : vector<8x128xf32>
    %cst_7 = arith.constant 0.000000e+00 : f32
    %19 = vector.broadcast %cst_7 : f32 to vector<8x128xf32>
    %20 = arith.cmpf oge, %3, %19 : vector<8x128xf32>
    %cst_8 = arith.constant 1.000000e+00 : f32
    %21 = vector.broadcast %cst_8 : f32 to vector<8x128xf32>
    %22 = arith.subf %21, %18 : vector<8x128xf32>
    %23 = arith.select %20, %18, %22 : vector<8x128xi1>, vector<8x128xf32>
    %24 = arith.mulf %4, %23 : vector<8x128xf32>
    %cst_9 = arith.constant 1.000000e+00 : f32
    %25 = vector.broadcast %cst_9 : f32 to vector<8x128xf32>
    %26 = arith.subf %25, %4 : vector<8x128xf32>
    %cst_10 = arith.constant 1.000000e+00 : f32
    %27 = vector.broadcast %cst_10 : f32 to vector<8x128xf32>
    %28 = arith.subf %27, %23 : vector<8x128xf32>
    %29 = arith.mulf %26, %28 : vector<8x128xf32>
    %30 = arith.addf %24, %29 : vector<8x128xf32>
    %cst_11 = arith.constant 1.000000e+00 : f32
    %31 = vector.broadcast %cst_11 : f32 to vector<8x128xf32>
    %32 = arith.subf %31, %30 : vector<8x128xf32>
    %33 = math.sqrt %32 : vector<8x128xf32>
    %34 = arith.mulf %32, %33 : vector<8x128xf32>
    %35 = arith.mulf %14, %34 : vector<8x128xf32>
    %cst_12 = arith.constant 2.500000e-01 : f32
    %36 = vector.broadcast %cst_12 : f32 to vector<8x128xf32>
    %37 = arith.mulf %4, %36 : vector<8x128xf32>
    %cst_13 = arith.constant 1.000000e+00 : f32
    %38 = vector.broadcast %cst_13 : f32 to vector<8x128xf32>
    %39 = arith.subf %38, %4 : vector<8x128xf32>
    %cst_14 = arith.constant 7.500000e-01 : f32
    %40 = vector.broadcast %cst_14 : f32 to vector<8x128xf32>
    %41 = arith.mulf %39, %40 : vector<8x128xf32>
    %42 = arith.addf %37, %41 : vector<8x128xf32>
    %43 = arith.mulf %35, %42 : vector<8x128xf32>
    %c0_15 = arith.constant 0 : index
    %c0_16 = arith.constant 0 : index
    %44 = vector.load %arg5[%c0_15, %c0_16] : memref<1x128xf32, #tpu.memory_space<vmem>>, vector<1x128xf32>
    %cst_17 = arith.constant dense<0.000000e+00> : vector<128xf32>
    %45 = vector.multi_reduction <add>, %43, %cst_17 [0] : vector<8x128xf32> to vector<128xf32>
    %46 = vector.shape_cast %45 : vector<128xf32> to vector<1x128xf32>
    %47 = arith.addf %44, %46 : vector<1x128xf32>
    %c0_18 = arith.constant 0 : index
    %c0_19 = arith.constant 0 : index
    %48 = vector.load %arg5[%c0_18, %c0_19] : memref<1x128xf32, #tpu.memory_space<vmem>>, vector<1x128xf32>
    tpu.vector_store %arg5[%c0_18, %c0_19], %47 {strides = array<i32>} : memref<1x128xf32, #tpu.memory_space<vmem>>, vector<1x128xf32>,
    %c0_i32_20 = arith.constant 0 : i32
    %49 = arith.cmpi eq, %arg1, %c0_i32_20 : i32
    %50 = arith.extui %49 : i1 to i32
    %c0_i32_21 = arith.constant 0 : i32
    %51 = arith.cmpi ne, %50, %c0_i32_21 : i32
    scf.if %51 {
      %c0_22 = arith.constant 0 : index
      %c0_23 = arith.constant 0 : index
      %52 = vector.load %arg5[%c0_22, %c0_23] : memref<1x128xf32, #tpu.memory_space<vmem>>, vector<1x128xf32>
      %cst_24 = arith.constant dense<0.000000e+00> : vector<1xf32>
      %53 = vector.multi_reduction <add>, %52, %cst_24 [1] : vector<1x128xf32> to vector<1xf32>
      %54 = vector.shape_cast %53 : vector<1xf32> to vector<1x1xf32>
      %55 = vector.shape_cast %54 : vector<1x1xf32> to vector<1x1x1xf32>
      %56 = vector.shape_cast %55 : vector<1x1x1xf32> to vector<1x1x1xf32>
      %57 = vector.broadcast %56 : vector<1x1x1xf32> to vector<1x1x128xf32>
      %c0_25 = arith.constant 0 : index
      %c0_26 = arith.constant 0 : index
      %c0_27 = arith.constant 0 : index
      %58 = vector.load %arg4[%c0_25, %c0_26, %c0_27] : memref<1x1x128xf32, #tpu.memory_space<vmem>>, vector<1x1x128xf32>
      tpu.vector_store %arg4[%c0_25, %c0_26, %c0_27], %57 {strides = array<i32>} : memref<1x1x128xf32, #tpu.memory_space<vmem>>, vector<1x1x128xf32>,
    } else {
    }
    return
  }
  func.func @transform_0(%arg0: i32, %arg1: i32) -> (i32, i32) {
    %c1_i32 = arith.constant 1 : i32
    %0 = arith.muli %arg0, %c1_i32 : i32
    %1 = arith.addi %0, %arg1 : i32
    %c0_i32 = arith.constant 0 : i32
    %c0_i32_0 = arith.constant 0 : i32
    return %1, %c0_i32 : i32, i32
  }
  func.func @transform_1(%arg0: i32, %arg1: i32) -> (i32, i32) {
    %c1_i32 = arith.constant 1 : i32
    %0 = arith.muli %arg0, %c1_i32 : i32
    %1 = arith.addi %0, %arg1 : i32
    %c0_i32 = arith.constant 0 : i32
    %c0_i32_0 = arith.constant 0 : i32
    return %1, %c0_i32 : i32, i32
  }
  func.func @transform_2(%arg0: i32, %arg1: i32) -> (i32, i32, i32) {
    %c0_i32 = arith.constant 0 : i32
    %c0_i32_0 = arith.constant 0 : i32
    %c0_i32_1 = arith.constant 0 : i32
    return %arg0, %c0_i32, %c0_i32_0 : i32, i32, i32
  }
}

</mosaic_0001>

<bundles_post_ra>
// kernel: tpu_custom_call.1
= control target key start
LH: loop header
LB: loop body
LE: loop exit
PB: predicated region body
PF: predicated region fallthrough
CT: control target
= control target key end

     0   :  { %7 = vsyncpa [#allocation4], 0  ;;  %s872_s0 = inlined_call_operand.hbm [shape: f32[16,128], index: 0, kind: input, shape index: {}]   ;;  %s873_s1 = inlined_call_operand.hbm [shape: f32[16,128], index: 1, kind: input, shape index: {}]   ;;  %s874_s2 = inlined_call_operand.hbm [shape: f32[2,1,128], index: 2, kind: output, shape index: {}]  }
   0x1   :  { %9 = vsyncpa [#allocation4 + $0x1], 0 }
   0x2   :  { %10 = vsyncpa [#allocation7], 0 }
   0x3   :  { %12 = vsyncpa [#allocation7 + $0x1], 0 }
   0x4   :  { %13 = vsyncpa [#allocation5], 0 }
   0x5   :  { %15 = vsyncpa [#allocation5 + $0x1], 0  ;;  %s651_s9 = smov 0   ;;  %s653_s10 = smov 0  }
   0x6   :  { %s655_s11 = smov 0   ;;  %s657_s12 = smov 0  }
   0x7   :  { %s659_s13 = smov 0   ;;  %s661_s14 = smov 0  }
   0x8 LB: > { %s394_s15 = sadd.s32 4294967295, %s630_s14   ;;  %s395_s16 = sadd.s32 4294967294, %s630_s14   ;;  %s630_s14 = sphi %s661_s14, %s21_s14   ;;  %s626_s13 = sphi %s659_s13, %s894_s13   ;;  %s622_s12 = sphi %s657_s12, %s893_s12   ;;  %s618_s11 = sphi %s655_s11, %s892_s11   ;;  %s614_s10 = sphi %s653_s10, %s891_s10   ;;  %s610_s9 = sphi %s651_s9, %s890_s9  }
   0x9   : > { %s33_s17 = sadd.s32 1, %s626_s13  ;;  %s42_s18 = sadd.s32 1, %s618_s11 }
   0xa   : > { %p35_p0 = scmp.ge.s32.totalorder %s33_s17, 2  ;;  %p49_p1 = scmp.ne.s32.totalorder %s618_s11, %s614_s10 }
   0xb   : > { %p50_p2 = scmp.eq.s32.totalorder %s630_s14, 0  ;;  %p55_p3 = scmp.ne.s32.totalorder %s614_s10, %s610_s9 }
   0xc   : > { %s896_s17 = smov (%p35_p0, %s33_s17), 0  ;;  %p56_p5 = scmp.eq.s32.totalorder %s394_s15, 0 }
   0xd   : > { %p692_p4 = por %p50_p2, %p49_p1  ;;  %s39_s20 = ssub.s32 %s626_s13, %s896_s17 }
   0xe   : > { %p107_p6 = scmp.eq.s32.totalorder %s394_s15, 1  ;;  %p40_p7 = scmp.eq.s32.totalorder %s39_s20, 0 }
   0xf   : > { %p698_p8 = por %p56_p5, %p55_p3  ;;  %p113_p10 = scmp.eq.s32.totalorder %s395_s16, 1 }
  0x10   : > { %p702_p9 = por %p107_p6, %p49_p1  ;;  %p425_p13 = scmp.lt.s32.totalorder %s630_s14, 2 }
  0x11   : > { %s878_s21 = scalar_select %p698_p8, 1, 0 }
  0x12   : > { %s879_s22 = scalar_select %p702_p9, 1, 0 }
  0x13   : > { %s707_s23 = scalar_select %p40_p7, %s618_s11, %s42_s18  }
  0x14   : > { %p709_p11 = por %p113_p10, %p55_p3  ;;  %s716_s25 = sand.u32 1, %s618_s11  }
  0x15   : > { %s398_s26 = sshll.u32 %s716_s25, 3  ;;  %s399_s27 = sshll.u32 %s626_s13, 7 }
  0x16   : > { %s880_s24 = scalar_select %p709_p11, 1, 0 }
  0x17   : > { %s725_s30 = scalar_lea.hbm %s872_s0, %s399_s27  ;;  %s137_s3 = scalar_lea.vmem [#allocation3], %s398_s26 }
  0x18   : > { %s145_s4 = sshll.u32 %s137_s3, 4  ;;  %p733_p0 = pnand %p425_p13, %p692_p4  ;;  %s729_s4 = int_to_ptr.vmem [resolvable:$true] %s145_s4 }
  0x19   : > { %s134_s6 = scalar_lea.sflag [#allocation4], %s716_s25  ;;  %s484_s7 = scalar_lea.hbm %s725_s30, 128 }
  0x1a   : > { %p485_p3 = scmp.ne.s32.totalorder %s725_s30, %s484_s7  ;;  %p486_p5 = pneg %p733_p0 }
  0x1b   : > { %s489_s16 = scalar_lea.hbm %s872_s0, 256  ;;  %p490_p4 = scmp.lt.u32.totalorder %s725_s30, %s872_s0 }
  0x1c   : > { %p487_p6 = pnand %p486_p5, %p485_p3  ;;  %p491_p10 = scmp.lt.u32.totalorder %s489_s16, %s484_s7 }
  0x1d   : > { %p493_p12 = scmp.lt.u32.totalorder %s484_s7, %s725_s30 }
  0x1e   : > { %p488_p7 = pneg %p487_p6  ;;  %p492_p13 = por %p491_p10, %p490_p4 }
  0x20   : > { %p494_p1 = por %p493_p12, %p492_p13 }
  0x22   : > { %p495_p2 = pnand %p494_p1, %p488_p7 }
  0x24   : > { %498 = shalt.err (!%p495_p2)
}
  0x25   : > { %s499_s20 = scalar_lea.vmem %s729_s4, 128  ;;  %s632_s28 = smov [#allocation3]  }
  0x26   : > { %p500_p3 = scmp.ne.s32.totalorder %s729_s4, %s499_s20  ;;  %s504_s29 = sshll.u32 %s632_s28, 4  ;;  %s505_s29 = int_to_ptr.vmem [resolvable:$false] %s504_s29 }
  0x27   : > { %s506_s3 = scalar_lea.vmem %s505_s29, 256  ;;  %p507_p9 = scmp.lt.s32.totalorder %s729_s4, %s505_s29 }
  0x28   : > { %p502_p6 = pnand %p500_p3, %p486_p5  ;;  %p508_p4 = scmp.lt.s32.totalorder %s506_s3, %s499_s20 }
  0x2a   : > { %p503_p11 = pneg %p502_p6  ;;  %p509_p10 = por %p508_p4, %p507_p9 }
  0x2c   : > { %p510_p12 = pnand %p509_p10, %p503_p11 }
  0x2e   : > { %513 = shalt.err (!%p510_p12)
}
  0x2f   : > { %417 = dma.hbm_to_vmem [thread:$0]  (!%p733_p0), %s725_s30, 128, %s729_s4, %s134_s6  }
  0x30   : > { %p882_p1 = scmp.lt.s32.totalorder %s630_s14, 3  ;;  %p883_p2 = scmp.ge.s32.totalorder %s630_s14, 1 }
  0x31   : > { %s778_s16 = scalar_lea.hbm %s873_s1, %s399_s27  ;;  %s156_s18 = scalar_lea.vmem [#allocation6], %s398_s26 }
  0x32   : > { %p769_p7 = pnand %p883_p2, %p882_p1  ;;  %s164_s19 = sshll.u32 %s156_s18, 4  ;;  %s165_s19 = int_to_ptr.vmem [resolvable:$true] %s164_s19 }
  0x33   : > { %s153_s30 = scalar_lea.sflag [#allocation7], %s716_s25  ;;  %s514_s4 = scalar_lea.hbm %s778_s16, 128 }
  0x34   : > { %s884_s7 = scalar_select %p769_p7, 1, 0 }
  0x35   : > { %p515_p9 = scmp.ne.s32.totalorder %s778_s16, %s514_s4  ;;  %s519_s27 = scalar_lea.hbm %s873_s1, 256 }
  0x36   : > { %p520_p3 = scmp.lt.u32.totalorder %s778_s16, %s873_s1  ;;  %p521_p6 = scmp.lt.u32.totalorder %s519_s27, %s514_s4 }
  0x37   : > { %p517_p11 = pnand %p515_p9, %p486_p5  ;;  %p523_p10 = scmp.lt.u32.totalorder %s514_s4, %s778_s16 }
  0x38   : > { %p522_p4 = por %p521_p6, %p520_p3 }
  0x39   : > { %p518_p13 = pneg %p517_p11 }
  0x3a   : > { %p524_p12 = por %p523_p10, %p522_p4 }
  0x3c   : > { %p525_p1 = pnand %p524_p12, %p518_p13 }
  0x3e   : > { %528 = shalt.err (!%p525_p1)
}
  0x3f   : > { %s529_s25 = scalar_lea.vmem %s165_s19, 128  ;;  %s633_s26 = smov [#allocation6]  }
  0x40   : > { %p530_p2 = scmp.ne.s32.totalorder %s165_s19, %s529_s25  ;;  %s534_s3 = sshll.u32 %s633_s26, 4  ;;  %s535_s3 = int_to_ptr.vmem [resolvable:$false] %s534_s3 }
  0x41   : > { %s536_s8 = scalar_lea.vmem %s535_s3, 256  ;;  %p537_p8 = scmp.lt.s32.totalorder %s165_s19, %s535_s3 }
  0x42   : > { %p532_p9 = pnand %p530_p2, %p486_p5  ;;  %p538_p7 = scmp.lt.s32.totalorder %s536_s8, %s529_s25 }
  0x44   : > { %p533_p11 = pneg %p532_p9  ;;  %p539_p3 = por %p538_p7, %p537_p8 }
  0x46   : > { %p540_p6 = pnand %p539_p3, %p533_p11 }
  0x48   : > { %543 = shalt.err (!%p540_p6)
}
  0x49   : > { %420 = dma.hbm_to_vmem [thread:$0]  (!%p733_p0), %s778_s16, 128, %s165_s19, %s153_s30  }
  0x4a   : > { %p885_p13 = scmp.ne.s32.totalorder %s884_s7, 0 }
  0x4b   : > { %s805_s15 = sand.u32 (!%p885_p13), 1, %s614_s10   ;;  %p886_p5 = scmp.ne.s32.totalorder (!%p885_p13), %s878_s21, 0 }
  0x4c   : > { %173 = sbr.rel (%p885_p13) target bundleno = 328 (0x148), region = 28  ;;  %s403_s18 = sshll.u32 (!%p885_p13), %s805_s15, 3 }
  0x4d   : > { %s176_s4 = scalar_lea.sflag (!%p885_p13), [#allocation4], %s805_s15  ;;  %s179_s6 = scalar_lea.vmem (!%p885_p13), [#allocation3], %s403_s18 }
  0x53   : > { %597 = dma.done.wait (%p886_p5), %s176_s4, 128  }
  0x54   : > { %599 = vsyncadd (%p886_p5), %s176_s4, 4294967168  ;;  %s185_s5 = scalar_lea.sflag [#allocation7], %s805_s15  ;;  %s188_s16 = scalar_lea.vmem [#allocation6], %s403_s18 }
  0x55   : > { %601 = dma.done.wait (%p886_p5), %s185_s5, 128  }
  0x56   : > { %603 = vsyncadd (%p886_p5), %s185_s5, 4294967168  ;;  %v634_v0 = vmov 0.0   ;;  %v220_v1 = vld [vmem:[%s179_s6] sm:$0xff]  ;;  %v221_v7 = vld [vmem:[%s188_s16] sm:$0xff]  ;;  %vm277_vm4 = vcmask 1040384   ;;  %s212_s21 = scalar_lea.vmem [#allocation8], %s805_s15 }
  0x57   : > { %219 = vst [vmem:[#allocation2] sm:$0x1] %v634_v0  ;;  %v222_v2 = vand.u32 2147483647, %v220_v1  ;;  %vm242_vm0 = vcmp.ge.f32.partialorder %v220_v1, 0.0  ;;  %v246_v10 = vsub.f32 1.0, %v221_v7  ;;  %v227_v22 = vmul.f32 %v221_v7, %v220_v1 }
  0x58   : > { %v226_v21 = vmax.f32 %v220_v1, 0.0  ;;  %v260_v30 = vmul.f32 0.25, %v221_v7  ;;  %s295_s7 = sshll.u32 %s212_s21, 4  ;;  %s405_s19 = sshll.u32 %s622_s12, 4  ;;  %s820_s7 = int_to_ptr.vmem [resolvable:$true] %s295_s7 }
  0x59   : > { %v223_v3 = vsub.f32 0.0, %v222_v2  ;;  %v261_v31 = vmul.f32 0.75, %v246_v10  ;;  %s825_s27 = scalar_lea.hbm %s874_s2, %s405_s19  ;;  %s283_s28 = scalar_lea.sflag [#allocation5], %s805_s15 }
  0x5a   : > { %v228_v25 = vsub.f32 %v226_v21, %v227_v22  ;;  %s544_s29 = scalar_lea.vmem %s820_s7, 16  ;;  %p887_p0 = scmp.ne.s32.totalorder %s879_s22, 0 }
  0x5b   : > { %v224_v4 = vmul.f32 1.442695, %v223_v3  ;;  %v262_v36 = vadd.f32 %v261_v31, %v260_v30  ;;  %p545_p8 = scmp.ne.s32.totalorder %s820_s7, %s544_s29  ;;  %s635_s25 = smov [#allocation8]  }
  0x5c   : > { %s548_s12 = sshll.u32 %s635_s25, 4  ;;  %s549_s12 = int_to_ptr.vmem [resolvable:$false] %s548_s12 }
  0x5d   : > { %476 = vpow2.f32 %v224_v4  ;;  %p546_p7 = pnand %p545_p8, %p887_p0  ;;  %s550_s26 = scalar_lea.vmem %s549_s12, 32 }
  0x5e   : > { %v264_v44 = vld [vmem:[#allocation2] sm:$0x1]  ;;  %p551_p10 = scmp.lt.s32.totalorder %s820_s7, %s549_s12  ;;  %p552_p12 = scmp.lt.s32.totalorder %s550_s26, %s544_s29 }
  0x5f   : > { %p547_p4 = pneg %p546_p7 }
  0x60   : > { %p553_p1 = por %p552_p12, %p551_p10 }
  0x62   : > { %p554_p2 = pnand %p553_p1, %p547_p4 }
  0x67   : > { %v477_v5 = vpop.eup %476 }
  0x68   : > { %v229_v6 = vadd.f32 1.0, %v477_v5  ;;  %v232_v16 = vmul.f32 -0.5, %v477_v5  ;;  %v235_v20 = vand.u32 2147483647, %v477_v5 }
  0x6a   : > { %478 = vrcp.f32 %v229_v6  ;;  %v233_v18 = vadd.f32 1.0, %v232_v16  ;;  %vm236_vm1 = vcmp.lt.f32.partialorder %v235_v20, 0.0004427343 }
  0x6b   : > { %480 = vlog2.f32 %v229_v6 }
  0x6c   : > { %v234_v24 = vmul.f32 %v477_v5, %v233_v18 }
  0x74   : > { %v479_v8 = vpop.eup %478 }
  0x75   : > { %v243_v9 = vsub.f32 1.0, %v479_v8  ;;  %v481_v19 = vpop.eup %480 }
  0x76   : > { %v231_v23 = vmul.f32 0.6931472, %v481_v19 }
  0x77   : > { %v244_v11 = vsel %vm242_vm0, %v479_v8, %v243_v9 }
  0x78   : > { %v245_v12 = vmul.f32 %v244_v11, %v221_v7  ;;  %v247_v13 = vsub.f32 1.0, %v244_v11  ;;  %v237_v27 = vsel %vm236_vm1, %v234_v24, %v231_v23 }
  0x79   : > { %v238_v32 = vadd.f32 %v237_v27, %v228_v25 }
  0x7a   : > { %v248_v14 = vmul.f32 %v247_v13, %v246_v10 }
  0x7c   : > { %v249_v15 = vadd.f32 %v248_v14, %v245_v12 }
  0x7e   : > { %v250_v17 = vsub.f32 1.0, %v249_v15 }
  0x80   : > { %482 = vrsqrt.f32 %v250_v17  ;;  %vm253_vm2 = vcmp.eq.f32.partialorder %v250_v17, inf  ;;  %v256_v28 = vand.u32 2147483648, %v250_v17  ;;  %vm255_vm3 = vcmp.eq.f32.partialorder %v250_v17, 0.0 }
  0x8a   : > { %v483_v26 = vpop.eup %482 }
  0x8b   : > { %v252_v29 = vmul.f32 %v483_v26, %v250_v17 }
  0x8d   : > { %v254_v33 = vsel %vm253_vm2, %v250_v17, %v252_v29 }
  0x8e   : > { %v257_v34 = vsel %vm255_vm3, %v256_v28, %v254_v33 }
  0x8f   : > { %v258_v35 = vmul.f32 %v257_v34, %v250_v17 }
  0x91   : > { %v259_v37 = vmul.f32 %v258_v35, %v238_v32 }
  0x93   : > { %v263_v38 = vmul.f32 %v262_v36, %v259_v37 }
  0x95   : > { %v265_v39 = vrot.slane %v263_v38, 4 }
  0x97   : > { %v266_v40 = vadd.f32 %v265_v39, %v263_v38 }
  0x99   : > { %v267_v41 = vrot.slane %v266_v40, 2 }
  0x9b   : > { %v268_v42 = vadd.f32 %v267_v41, %v266_v40 }
  0x9d   : > { %v269_v43 = vrot.slane %v268_v42, 1 }
  0x9f   : > { %v270_v45 = vadd.f32 %v269_v43, %v268_v42 }
  0xa1   : > { %v271_v46 = vadd.f32 %v270_v45, %v264_v44 }
  0xa3   : > { %272 = vst [vmem:[#allocation2] sm:$0x1] %v271_v46 }
  0xaa   : > { %v276_v47 = vld [vmem:[#allocation2] sm:$0x1] }
  0xab   : > { %v278_v48 = vsel %vm277_vm4, %v276_v47, 0.0 }
  0xac   : > { %279 = vadd.xlane.f32.xlu0 %v278_v48 }
 0x139   : > { %v280_v49 = vpop.xlane.xlu0 %279 }
 0x13a   : > { %281 = vst [vmem:[%s212_s21] sm:$0x1] %v280_v49 }
 0x13b   : > { %557 = shalt.err (!%p554_p2)
}
 0x13c   : > { %s558_s3 = scalar_lea.hbm %s825_s27, 16  ;;  %s562_s18 = scalar_lea.hbm %s874_s2, 32 }
 0x13d   : > { %p559_p9 = scmp.ne.s32.totalorder %s825_s27, %s558_s3  ;;  %p563_p6 = scmp.lt.u32.totalorder %s825_s27, %s874_s2 }
 0x13e   : > { %p564_p13 = scmp.lt.u32.totalorder %s562_s18, %s558_s3  ;;  %p566_p8 = scmp.lt.u32.totalorder %s558_s3, %s825_s27 }
 0x13f   : > { %p560_p11 = pnand %p559_p9, %p887_p0 }
 0x140   : > { %p565_p5 = por %p564_p13, %p563_p6 }
 0x141   : > { %p561_p3 = pneg %p560_p11 }
 0x142   : > { %p567_p7 = por %p566_p8, %p565_p5 }
 0x144   : > { %p568_p4 = pnand %p567_p7, %p561_p3 }
 0x146   : > { %571 = shalt.err (!%p568_p4)
}
 0x147   : > { %412 = dma.vmem_to_hbm [thread:$0]  (%p887_p0), %s820_s7, 16, %s825_s27, %s283_s28  }
 0x148 PF: > { %s307_s5 = sand.u32 1, %s610_s9   ;;  %p888_p10 = scmp.ne.s32.totalorder %s880_s24, 0 }
 0x149   : > { %p889_p12 = scmp.ge.s32.totalorder %s630_s14, 2  ;;  %s308_s16 = scalar_lea.sflag [#allocation5], %s307_s5 }
 0x14b   : > { %p422_p1 = pnand %p889_p12, %p888_p10 }
 0x14d   : > { %605 = dma.done.wait (!%p422_p1), %s308_s16, 16  }
 0x14e   : > { %607 = vsyncadd (!%p422_p1), %s308_s16, 4294967280  ;;  %s21_s14 = sadd.s32 1, %s630_s14   ;;  %s890_s9 = smov %s614_s10 }
 0x14f   : > { %p18_p2 = scmp.ge.s32.totalorder %s21_s14, 4   ;;  %s891_s10 = smov %s618_s11 }
 0x150   : > { %s892_s11 = smov %s707_s23  ;;  %s893_s12 = smov %s626_s13 }
 0x151   : > { %s894_s13 = smov %s896_s17  ;;  %20 = sbr.rel (!%p18_p2) target bundleno = 8 (0x8), region = 94 }
 0x158   :  { %312 = vsyncpa [#allocation4], 1 }
 0x159   :  { %314 = vsyncpa [#allocation4 + $0x1], 1 }
 0x15a   :  { %315 = vsyncpa [#allocation7], 1 }
 0x15b   :  { %317 = vsyncpa [#allocation7 + $0x1], 1 }
 0x15c   :  { %318 = vsyncpa [#allocation5], 1 }
 0x15d   :  { %320 = vsyncpa [#allocation5 + $0x1], 1 }

</bundles_post_ra>
